<compile_context>
chip_gen: v7x
topology: tpu7x:2x2x1
jax: 0.10.0
libtpu: 0.0.40
codegen_flags: <defaults>
</compile_context>

<pallas_src>
import functools

import jax
import jax.numpy as jnp
from jax import lax
from jax.experimental import pallas as pl
from jax.experimental.pallas import tpu as pltpu

_NUM_CORES = 2  # leading "parallel" grid axis; uses both TCs on v7x


def _brier_kernel(targets_ref, logits_ref, out_ref, acc_ref, *,
                  n_total, tile_b, blocks_per_core):
    c = pl.program_id(0)   # core-split axis ("parallel")
    i = pl.program_id(1)   # batch-block axis ("arbitrary", reduction)

    @pl.when(i == 0)
    def _():
        acc_ref[...] = jnp.zeros_like(acc_ref)

    # Global (unclamped) block id & row ids.  Rows >= n_total (padded trailing
    # block, or a duplicate clamped block on the second core split) are masked
    # out of the only cross-row sum below.
    blk = c * blocks_per_core + i
    row = blk * tile_b + lax.broadcasted_iota(jnp.int32, (tile_b, 1), 0)  # (TB,1)
    valid = row < n_total

    x = logits_ref[...].astype(jnp.float32)         # (TB, C) upcast after load

    # softmax over classes (is_logit=True path).  No per-element sanitize:
    # max / exp-sum are per-row, so padded-row garbage cannot cross rows.
    m = jnp.max(x, axis=-1, keepdims=True)
    e = jnp.exp(x - m)
    p = e * pl.reciprocal(jnp.sum(e, axis=-1, keepdims=True), approx=False)

    t = targets_ref[...]                                          # (TB, 1) int32
    cls = lax.broadcasted_iota(jnp.int32, (1, x.shape[1]), 1)     # (1, C)
    onehot = (cls == t).astype(jnp.float32)                       # -> (TB, C)

    d = p - onehot
    sq = jnp.where(valid, d * d, 0.0)               # mask padded / duplicate rows

    # Deferred reduction: collapse only the batch (sublane) axis per step; the
    # cross-lane collapse happens once per core at the end.
    acc_ref[...] += jnp.sum(sq, axis=0, keepdims=True)            # (1, C)

    @pl.when(i == pl.num_programs(1) - 1)
    def _():
        # Per-core partial sum (NOT divided by N); wrapper finishes the mean.
        out_ref[0] = jnp.sum(acc_ref[...], axis=-1, keepdims=True)  # (1, 1)


def _choose_tile_b(n, c, itemsize):
    """Pick a batch tile so that (double-buffered inputs + in-kernel f32
    temporaries from the softmax reductions) stays within ~32 MiB - safe under
    v7x's 64 MiB physical VMEM and trivial on v5e/v6e - targeting ~10 MiB of
    logits per block."""
    target_block_bytes = 10 << 20
    max_working_set = 32 << 20
    logits_row = c * itemsize
    targets_row = 128 * 4            # (tile_b, 1) int32 lane-pads to 128 lanes
    temps_row = 3 * c * 4            # f32 upcast + exp + prob/diff temporaries
    per_row_ws = 2 * (logits_row + targets_row) + temps_row
    tb = target_block_bytes // max(logits_row, 1)
    tb = min(tb, max_working_set // per_row_ws)
    n_pad8 = ((n + 7) // 8) * 8
    tb = min(tb, n_pad8)
    tb = max(8, (tb // 8) * 8)
    return int(tb)


def brier_score_loss(logits, targets, *, tile_b=None):
    """logits: (N, C) float (f32 or bf16); targets: (N,) int labels -> scalar f32.

    If the producer can emit bf16 logits, pass them as bf16: HBM traffic halves
    (the kernel upcasts to f32 after the load either way).
    """
    N, C = logits.shape
    itemsize = jnp.dtype(logits.dtype).itemsize
    if tile_b is None:
        tile_b = _choose_tile_b(N, C, itemsize)
    assert tile_b % 8 == 0

    targets2d = targets.astype(jnp.int32).reshape(N, 1)
    num_blocks = -(-N // tile_b)                     # cdiv
    blocks_per_core = -(-num_blocks // _NUM_CORES)   # cdiv

    kernel = functools.partial(_brier_kernel, n_total=N, tile_b=tile_b,
                               blocks_per_core=blocks_per_core)

    def _blk_map(c, i):
        # Clamp so the DMA window never runs past the array; duplicate blocks
        # on the trailing core split are zeroed by the in-kernel row mask.
        return (jnp.minimum(c * blocks_per_core + i, num_blocks - 1), 0)

    # VMEM budget: double-buffered inputs + full-block f32 temporaries.
    per_row_ws = 2 * (C * itemsize + 128 * 4) + 3 * C * 4
    working_set = tile_b * per_row_ws + C * 4
    vmem_limit = int(min(max(working_set * 3 // 2, 16 << 20), 48 << 20))

    cost = pl.CostEstimate(
        flops=int(9 * N * C),
        transcendentals=int(N * C),
        bytes_accessed=int(N * C * itemsize + N * 4 + 8),
    )

    out = pl.pallas_call(
        kernel,
        out_shape=jax.ShapeDtypeStruct((_NUM_CORES, 1, 1), jnp.float32),
        grid_spec=pltpu.PrefetchScalarGridSpec(
            num_scalar_prefetch=0,
            grid=(_NUM_CORES, blocks_per_core),
            in_specs=[
                pl.BlockSpec((tile_b, 1), _blk_map),    # targets
                pl.BlockSpec((tile_b, C), _blk_map),    # logits
            ],
            out_specs=pl.BlockSpec((1, 1, 1), lambda c, i: (c, 0, 0)),
            scratch_shapes=[pltpu.VMEM((1, C), jnp.float32)],  # deferred accum
        ),
        compiler_params=pltpu.CompilerParams(
            dimension_semantics=("parallel", "arbitrary"),
            vmem_limit_bytes=vmem_limit,
        ),
        cost_estimate=cost,
    )(targets2d, logits)

    # Sum the per-core partials and finish the mean in the wrapper.
    return jnp.sum(out) / jnp.float32(N)


def _reference(logits, targets):
    p = jax.nn.softmax(logits.astype(jnp.float32), axis=-1)
    onehot = jax.nn.one_hot(targets, logits.shape[1], dtype=jnp.float32)
    return jnp.mean(jnp.sum((p - onehot) ** 2, axis=-1))


if __name__ == "__main__":
    key = jax.random.PRNGKey(0)
    k1, k2 = jax.random.split(key)

    # Small shapes consistent with the module: batch=16 samples, 32 classes.
    N, C = 16, 32
    logits = jax.random.normal(k1, (N, C), dtype=jnp.float32)
    targets = jax.random.randint(k2, (N,), 0, C, dtype=jnp.int32)

    loss = jax.block_until_ready(brier_score_loss(logits, targets))
    ref = _reference(logits, targets)
    if not jnp.allclose(loss, ref, atol=1e-5, rtol=1e-5):
        raise AssertionError(f"mismatch: kernel={loss} ref={ref}")

    # Ragged batch: partial trailing block + duplicate clamped core-split block.
    N2 = 13
    logits2 = jax.random.normal(k1, (N2, C), dtype=jnp.float32)
    targets2 = jax.random.randint(k2, (N2,), 0, C, dtype=jnp.int32)
    loss2 = jax.block_until_ready(brier_score_loss(logits2, targets2))
    ref2 = _reference(logits2, targets2)
    if not jnp.allclose(loss2, ref2, atol=1e-5, rtol=1e-5):
        raise AssertionError(f"ragged mismatch: kernel={loss2} ref={ref2}")

    # bf16 logits path (the HBM-bandwidth lever on v5e/v6e).
    logits3 = logits.astype(jnp.bfloat16)
    loss3 = jax.block_until_ready(brier_score_loss(logits3, targets))
    ref3 = _reference(logits3.astype(jnp.float32), targets)
    if not jnp.allclose(loss3, ref3, atol=2e-2, rtol=2e-2):
        raise AssertionError(f"bf16 mismatch: kernel={loss3} ref={ref3}")

    print("KERNEL_OK")
</pallas_src>

<mosaic_0001>
module attributes {stable_mosaic.version = 11 : i64} {
  func.func @_brier_kernel(%arg0: i32, %arg1: i32, %arg2: memref<16x1xi32, #tpu.memory_space<vmem>>, %arg3: memref<16x32xf32, #tpu.memory_space<vmem>>, %arg4: memref<1x1x1xf32, #tpu.memory_space<vmem>>, %arg5: memref<1x32xf32, #tpu.memory_space<vmem>>) attributes {dimension_semantics = [#tpu.dimension_semantics<parallel>, #tpu.dimension_semantics<arbitrary>], iteration_bounds = array<i64: 2, 1>, scalar_prefetch = 0 : i64, scratch_operands = 1 : i64, tpu.core_type = #tpu.core_type<tc>, window_params = [{transform_indices = @transform_0, window_bounds = array<i64: 16, 1>}, {transform_indices = @transform_1, window_bounds = array<i64: 16, 32>}, {transform_indices = @transform_2, window_bounds = array<i64: 1, 1, 1>}]} {
    %c0_i32 = arith.constant 0 : i32
    %0 = arith.cmpi eq, %arg1, %c0_i32 : i32
    %1 = arith.extui %0 : i1 to i32
    %c0_i32_0 = arith.constant 0 : i32
    %2 = arith.cmpi ne, %1, %c0_i32_0 : i32
    scf.if %2 {
      %cst_14 = arith.constant 0.000000e+00 : f32
      %43 = vector.broadcast %cst_14 : f32 to vector<1x32xf32>
      %c0_15 = arith.constant 0 : index
      %c0_16 = arith.constant 0 : index
      %44 = vector.load %arg5[%c0_15, %c0_16] : memref<1x32xf32, #tpu.memory_space<vmem>>, vector<1x32xf32>
      tpu.vector_store %arg5[%c0_15, %c0_16], %43 {strides = array<i32>} : memref<1x32xf32, #tpu.memory_space<vmem>>, vector<1x32xf32>,
    } else {
    }
    %c1_i32 = arith.constant 1 : i32
    %3 = arith.muli %arg0, %c1_i32 : i32
    %4 = arith.addi %3, %arg1 : i32
    %c16_i32 = arith.constant 16 : i32
    %5 = arith.muli %4, %c16_i32 : i32
    %6 = tpu.iota {dimensions = array<i32: 0>} : vector<16x1xi32>
    %7 = vector.broadcast %5 : i32 to vector<16x1xi32>
    %8 = arith.addi %7, %6 : vector<16x1xi32>
    %c16_i32_1 = arith.constant 16 : i32
    %9 = vector.broadcast %c16_i32_1 : i32 to vector<16x1xi32>
    %10 = arith.cmpi slt, %8, %9 : vector<16x1xi32>
    %c0 = arith.constant 0 : index
    %c0_2 = arith.constant 0 : index
    %11 = vector.load %arg3[%c0, %c0_2] : memref<16x32xf32, #tpu.memory_space<vmem>>, vector<16x32xf32>
    %cst = arith.constant dense<0xFF800000> : vector<16xf32>
    %12 = vector.multi_reduction <maximumf>, %11, %cst [1] : vector<16x32xf32> to vector<16xf32>
    %13 = vector.shape_cast %12 : vector<16xf32> to vector<16x1xf32>
    %14 = vector.broadcast %13 : vector<16x1xf32> to vector<16x32xf32>
    %15 = arith.subf %11, %14 : vector<16x32xf32>
    %16 = math.exp %15 : vector<16x32xf32>
    %cst_3 = arith.constant dense<0.000000e+00> : vector<16xf32>
    %17 = vector.multi_reduction <add>, %16, %cst_3 [1] : vector<16x32xf32> to vector<16xf32>
    %18 = vector.shape_cast %17 : vector<16xf32> to vector<16x1xf32>
    %19 = tpu.reciprocal %18 : vector<16x1xf32> -> vector<16x1xf32>
    %20 = vector.broadcast %19 : vector<16x1xf32> to vector<16x32xf32>
    %21 = arith.mulf %16, %20 : vector<16x32xf32>
    %c0_4 = arith.constant 0 : index
    %c0_5 = arith.constant 0 : index
    %22 = vector.load %arg2[%c0_4, %c0_5] : memref<16x1xi32, #tpu.memory_space<vmem>>, vector<16x1xi32>
    %23 = tpu.iota {dimensions = array<i32: 1>} : vector<1x32xi32>
    %24 = vector.broadcast %23 : vector<1x32xi32> to vector<16x32xi32>
    %25 = vector.broadcast %22 : vector<16x1xi32> to vector<16x32xi32>
    %26 = arith.cmpi eq, %24, %25 : vector<16x32xi32>
    %27 = arith.extui %26 : vector<16x32xi1> to vector<16x32xi32>
    %28 = arith.sitofp %27 : vector<16x32xi32> to vector<16x32xf32>
    %29 = arith.subf %21, %28 : vector<16x32xf32>
    %30 = arith.mulf %29, %29 : vector<16x32xf32>
    %cst_6 = arith.constant 0.000000e+00 : f32
    %31 = vector.shape_cast %10 : vector<16x1xi1> to vector<16x1xi1>
    %32 = vector.broadcast %31 : vector<16x1xi1> to vector<16x32xi1>
    %33 = vector.broadcast %cst_6 : f32 to vector<16x32xf32>
    %34 = arith.select %32, %30, %33 : vector<16x32xi1>, vector<16x32xf32>
    %c0_7 = arith.constant 0 : index
    %c0_8 = arith.constant 0 : index
    %35 = vector.load %arg5[%c0_7, %c0_8] : memref<1x32xf32, #tpu.memory_space<vmem>>, vector<1x32xf32>
    %cst_9 = arith.constant dense<0.000000e+00> : vector<32xf32>
    %36 = vector.multi_reduction <add>, %34, %cst_9 [0] : vector<16x32xf32> to vector<32xf32>
    %37 = vector.shape_cast %36 : vector<32xf32> to vector<1x32xf32>
    %38 = arith.addf %35, %37 : vector<1x32xf32>
    %c0_10 = arith.constant 0 : index
    %c0_11 = arith.constant 0 : index
    %39 = vector.load %arg5[%c0_10, %c0_11] : memref<1x32xf32, #tpu.memory_space<vmem>>, vector<1x32xf32>
    tpu.vector_store %arg5[%c0_10, %c0_11], %38 {strides = array<i32>} : memref<1x32xf32, #tpu.memory_space<vmem>>, vector<1x32xf32>,
    %c0_i32_12 = arith.constant 0 : i32
    %40 = arith.cmpi eq, %arg1, %c0_i32_12 : i32
    %41 = arith.extui %40 : i1 to i32
    %c0_i32_13 = arith.constant 0 : i32
    %42 = arith.cmpi ne, %41, %c0_i32_13 : i32
    scf.if %42 {
      %c0_14 = arith.constant 0 : index
      %c0_15 = arith.constant 0 : index
      %43 = vector.load %arg5[%c0_14, %c0_15] : memref<1x32xf32, #tpu.memory_space<vmem>>, vector<1x32xf32>
      %cst_16 = arith.constant dense<0.000000e+00> : vector<1xf32>
      %44 = vector.multi_reduction <add>, %43, %cst_16 [1] : vector<1x32xf32> to vector<1xf32>
      %45 = vector.shape_cast %44 : vector<1xf32> to vector<1x1xf32>
      %c0_17 = arith.constant 0 : index
      %c0_18 = arith.constant 0 : index
      %c0_19 = arith.constant 0 : index
      %46 = vector.load %arg4[%c0_17, %c0_18, %c0_19] : memref<1x1x1xf32, #tpu.memory_space<vmem>>, vector<1x1x1xf32>
      %47 = vector.shape_cast %46 : vector<1x1x1xf32> to vector<1x1xf32>
      %48 = vector.shape_cast %45 : vector<1x1xf32> to vector<1x1x1xf32>
      tpu.vector_store %arg4[%c0_17, %c0_18, %c0_19], %48 {strides = array<i32>} : memref<1x1x1xf32, #tpu.memory_space<vmem>>, vector<1x1x1xf32>,
    } else {
    }
    return
  }
  func.func @transform_0(%arg0: i32, %arg1: i32) -> (i32, i32) {
    %c1_i32 = arith.constant 1 : i32
    %0 = arith.muli %arg0, %c1_i32 : i32
    %1 = arith.addi %0, %arg1 : i32
    %c0_i32 = arith.constant 0 : i32
    %2 = arith.minsi %1, %c0_i32 : i32
    %c0_i32_0 = arith.constant 0 : i32
    %c0_i32_1 = arith.constant 0 : i32
    return %2, %c0_i32_0 : i32, i32
  }
  func.func @transform_1(%arg0: i32, %arg1: i32) -> (i32, i32) {
    %c1_i32 = arith.constant 1 : i32
    %0 = arith.muli %arg0, %c1_i32 : i32
    %1 = arith.addi %0, %arg1 : i32
    %c0_i32 = arith.constant 0 : i32
    %2 = arith.minsi %1, %c0_i32 : i32
    %c0_i32_0 = arith.constant 0 : i32
    %c0_i32_1 = arith.constant 0 : i32
    return %2, %c0_i32_0 : i32, i32
  }
  func.func @transform_2(%arg0: i32, %arg1: i32) -> (i32, i32, i32) {
    %c0_i32 = arith.constant 0 : i32
    %c0_i32_0 = arith.constant 0 : i32
    %c0_i32_1 = arith.constant 0 : i32
    return %arg0, %c0_i32, %c0_i32_0 : i32, i32, i32
  }
}

</mosaic_0001>

<bundles_post_ra>
// kernel: tpu_custom_call.1
= control target key start
LH: loop header
LB: loop body
LE: loop exit
PB: predicated region body
PF: predicated region fallthrough
CT: control target
= control target key end

     0   :  { %s465_s9 = smov 0   ;;  %s467_s10 = smov 0   ;;  %s517_s0 = inlined_call_operand.vmem [shape: s32[16,1], index: 0, kind: input, shape index: {}]   ;;  %s518_s1 = inlined_call_operand.vmem [shape: f32[16,32], index: 1, kind: input, shape index: {}]   ;;  %s519_s2 = inlined_call_operand.vmem [shape: f32[2,1,1], index: 2, kind: output, shape index: {}]  }
   0x1   :  { %s469_s11 = smov 0  }
   0x2 LB: > { %s24_s12 = sadd.s32 1, %s442_s10  ;;  %p378_p0 = scmp.ge.s32.totalorder %s446_s11, 1  ;;  %s446_s11 = sphi %s469_s11, %s12_s11   ;;  %s442_s10 = sphi %s467_s10, %s521_s10   ;;  %s438_s9 = sphi %s465_s9, %s520_s9  }
   0x3   : > { %p26_p1 = scmp.ge.s32.totalorder %s24_s12, 2  ;;  %p160_p2 = scmp.lt.s32.totalorder %s446_s11, 3 }
   0x5   : > { %s523_s12 = smov (%p26_p1, %s24_s12), 0  ;;  %p161_p3 = pnand %p378_p0, %p160_p2 }
   0x6   : > { %p192_p4 = scmp.lt.s32.totalorder (!%p161_p3), %s438_s9, 0  ;;  %vm236_vm0 = vcmask (!%p161_p3), 261120   ;;  %v448_v4 = vmov (!%p161_p3), 0   ;;  %vm222_vm1 = vcmask (!%p161_p3), 253952   ;;  %v449_v17 = vmov (!%p161_p3), 0.0   ;;  %s383_s22 = sshll.u32 (!%p161_p3), %s438_s9, 4 }
   0x7   : > { %164 = sbr.rel (%p161_p3) target bundleno = 515 (0x203), region = 28  ;;  %414 = vset.pattern.permute.xlu0 (!%p161_p3), %v448_v4  ;;  %415 = vset.pattern.permute.xlu1 (!%p161_p3), %v448_v4  ;;  %223 = vst.msk [vmem:[#allocation2] sm:$0x1] (!%p161_p3), %vm222_vm1, %v449_v17  ;;  %v226_v19 = vlaneseq (!%p161_p3)  ;;  %v229_v25 = vstv (!%p161_p3), %s383_s22  ;;  %p215_p6 = scmp.lt.s32.totalorder (!%p161_p3), %s438_s9, 1  ;;  %vm305_vm6 = vcmask (!%p161_p3), 0  }
   0x9   : > { %v262_v21 = vand.u32 (!%p161_p3), 127, %v226_v19  ;;  %v227_v23 = vshrl.u32 (!%p161_p3), %v226_v19, 7 }
   0xb   : > { %v228_v28 = vadd.s32 (!%p161_p3), 8, %v227_v23  ;;  %v230_v30 = vadd.s32 (!%p161_p3), %v229_v25, %v227_v23 }
   0xd   : > { %v231_v33 = vadd.s32 (!%p161_p3), %v229_v25, %v228_v28  ;;  %vm232_vm4 = vcmp.lt.s32.totalorder (!%p161_p3), %v230_v30, 16 }
   0xe   : > { %s193_s13 = scalar_select %p192_p4, %s438_s9, 0  ;;  %v285_v49 = vld [vmem:[#allocation2] sm:$0x1] }
   0xf   : > { %vm233_vm5 = vcmp.lt.s32.totalorder %v231_v33, 16  ;;  %s527_s9 = smov (!%p215_p6, %s438_s9), 1 }
  0x10   : > { %s379_s14 = sshll.u32 %s193_s13, 1  ;;  %s217_s25 = scalar_lea.vmem %s519_s2, %s527_s9 }
  0x11   : > { %p195_p5 = scmp.lt.s32.totalorder %s379_s14, 1 }
  0x13   : > { %s525_s14 = smov (!%p195_p5, %s379_s14), 1 }
  0x14   : > { %s380_s15 = sshll.u32 %s525_s14, 3 }
  0x15   : > { %s210_s18 = scalar_lea.vmem %s518_s1, %s380_s15  ;;  %s198_s21 = scalar_lea.vmem %s517_s0, %s380_s15 }
  0x16   : > { %v234_v0 = vld [vmem:[%s210_s18] sm:$0xff]  ;;  %v235_v1 = vld [vmem:[%s210_s18 + $0x8] sm:$0xff] }
  0x17   : > { %v237_v2 = vsel %vm236_vm0, %v234_v0, -inf  ;;  %v240_v3 = vsel %vm236_vm0, %v235_v1, -inf  ;;  %v259_v5 = vld [vmem:[%s198_s21] sm:$0xff]  ;;  %v260_v16 = vld [vmem:[%s198_s21 + $0x8] sm:$0xff] }
  0x18   : > { %238 = vmax.xlane.f32.xlu0 %v237_v2 }
  0x1c   : > { %241 = vmax.xlane.f32.xlu0 %v240_v3 }
  0x32   : > { %264 = vperm.xlu0 %414, %v259_v5  }
  0xa5   : > { %v239_v6 = vpop.xlane.xlu0 %238 }
  0xa6   : > { %v243_v7 = vsub.f32 %v234_v0, %v239_v6 }
  0xa8   : > { %v245_v8 = vmul.f32 1.442695, %v243_v7 }
  0xa9   : > { %v242_v9 = vpop.xlane.xlu0 %241 }
  0xaa   : > { %416 = vpow2.f32 %v245_v8  ;;  %v244_v10 = vsub.f32 %v235_v1, %v242_v9 }
  0xac   : > { %v247_v11 = vmul.f32 1.442695, %v244_v10 }
  0xae   : > { %418 = vpow2.f32 %v247_v11 }
  0xb1   : > { %v265_v22 = vpop.permute.xlu0 %264 }
  0xb2   : > { %vm269_vm2 = vcmp.eq.s32.totalorder %v262_v21, %v265_v22 }
  0xb3   : > { %v384_v27 = vsel %vm269_vm2, 1.0, %v449_v17 }
  0xb4   : > { %v417_v12 = vpop.eup %416 }
  0xb5   : > { %v249_v13 = vsel %vm236_vm0, %v417_v12, 0.0 }
  0xb6   : > { %250 = vadd.xlane.f32.xlu1 %v249_v13 }
  0xb8   : > { %v419_v14 = vpop.eup %418 }
  0xb9   : > { %v252_v15 = vsel %vm236_vm0, %v419_v14, 0.0 }
  0xba   : > { %253 = vadd.xlane.f32.xlu1 %v252_v15 }
  0xcb   : > { %267 = vperm.xlu1 %415, %v260_v16  }
 0x143   : > { %v251_v18 = vpop.xlane.xlu1 %250 }
 0x144   : > { %420 = vrcp.f32 %v251_v18 }
 0x147   : > { %v254_v20 = vpop.xlane.xlu1 %253 }
 0x148   : > { %422 = vrcp.f32 %v254_v20 }
 0x14b   : > { %v268_v24 = vpop.permute.xlu1 %267 }
 0x14c   : > { %vm270_vm3 = vcmp.eq.s32.totalorder %v262_v21, %v268_v24 }
 0x14d   : > { %v385_v34 = vsel %vm270_vm3, 1.0, %v449_v17 }
 0x14e   : > { %v421_v26 = vpop.eup %420 }
 0x14f   : > { %v257_v29 = vmul.f32 %v421_v26, %v417_v12 }
 0x151   : > { %v275_v31 = vsub.f32 %v257_v29, %v384_v27 }
 0x152   : > { %v423_v32 = vpop.eup %422 }
 0x153   : > { %v277_v35 = vmul.f32 %v275_v31, %v275_v31  ;;  %v258_v36 = vmul.f32 %v423_v32, %v419_v14 }
 0x155   : > { %v276_v37 = vsub.f32 %v258_v36, %v385_v34  ;;  %v283_v38 = vsel %vm232_vm4, %v277_v35, 0.0 }
 0x156   : > { %v286_v41 = vsel %vm236_vm0, %v283_v38, 0.0 }
 0x157   : > { %v278_v39 = vmul.f32 %v276_v37, %v276_v37 }
 0x159   : > { %v284_v40 = vsel %vm233_vm5, %v278_v39, 0.0 }
 0x15a   : > { %v287_v42 = vsel %vm236_vm0, %v284_v40, 0.0 }
 0x15b   : > { %v288_v43 = vadd.f32 %v287_v42, %v286_v41 }
 0x15d   : > { %v289_v44 = vrot.slane %v288_v43, 4 }
 0x15f   : > { %v290_v45 = vadd.f32 %v289_v44, %v288_v43 }
 0x161   : > { %v291_v46 = vrot.slane %v290_v45, 2 }
 0x163   : > { %v292_v47 = vadd.f32 %v291_v46, %v290_v45 }
 0x165   : > { %v293_v48 = vrot.slane %v292_v47, 1 }
 0x167   : > { %v294_v50 = vadd.f32 %v293_v48, %v292_v47 }
 0x169   : > { %v295_v51 = vadd.f32 %v294_v50, %v285_v49 }
 0x16b   : > { %297 = vst.msk [vmem:[#allocation2] sm:$0x1] %vm222_vm1, %v295_v51 }
 0x172   : > { %v301_v52 = vld [vmem:[#allocation2] sm:$0x1] }
 0x173   : > { %v302_v53 = vsel %vm222_vm1, %v301_v52, 0.0 }
 0x174   : > { %303 = vadd.xlane.f32.xlu1 %v302_v53 }
 0x201   : > { %v304_v54 = vpop.xlane.xlu1 %303 }
 0x202   : > { %306 = vst.msk [vmem:[%s217_s25] sm:$0x1] %vm305_vm6, %v304_v54 }
 0x203 PF: > { %s12_s11 = sadd.s32 1, %s446_s11   ;;  %s520_s9 = smov %s442_s10 }
 0x204   : > { %p9_p7 = scmp.ge.s32.totalorder %s12_s11, 4   ;;  %s521_s10 = smov %s523_s12 }
 0x206   :  { %11 = sbr.rel (!%p9_p7) target bundleno = 2 (0x2), region = 69 }

</bundles_post_ra>
